<compile_context>
chip_gen: v6e
topology: v6e:2x2x1
jax: 0.10.0
libtpu: 0.0.40
codegen_flags: <defaults>
</compile_context>

<pallas_src>
import jax
import jax.numpy as jnp
from jax.experimental import pallas as pl
from jax.experimental.pallas import tpu as pltpu

_LANE = 128


def _pelu_kernel(params_ref, x_ref, o_ref):
    # params_ref: SMEM f32[3] = [alpha, alpha/beta, -1/beta]
    alpha = params_ref[0]
    a_over_b = params_ref[1]
    neg_inv_beta = params_ref[2]

    x = x_ref[...].astype(jnp.float32)
    posx = jnp.maximum(x, 0.0)
    # relu(-x)/beta == min(x, 0) * (-1/beta); sign folded into the scalar.
    negpart = jnp.minimum(x, 0.0)
    # Keep exp(.) - 1 (not expm1) to match the PyTorch forward structure.
    # NOTE: beta == 0 is not guarded (matches the reference).
    out = a_over_b * posx + alpha * (jnp.exp(negpart * neg_inv_beta) - 1.0)
    o_ref[...] = out.astype(o_ref.dtype)


def pelu(x, alpha, beta, *, target_block_bytes=2 * 1024 * 1024):
    """Apply PELU elementwise to `x` (any shape, any float dtype)."""
    orig_shape = x.shape
    dtype = x.dtype
    itemsize = jnp.dtype(dtype).itemsize
    # Minimum sublane tile: 8 for 4-byte, 16 for 2-byte, 32 for 1-byte dtypes.
    sublane = max(8, 32 // itemsize)

    # Pad only to a lane multiple (128 elements); row count need not be
    # divisible by the sublane tile or block_rows — Pallas masks the ragged
    # last block.  PELU(0) == 0 so the pad values are harmless (and sliced
    # off below anyway).
    flat = x.reshape(-1)
    n = flat.shape[0]
    padded_n = ((n + _LANE - 1) // _LANE) * _LANE
    if padded_n != n:
        flat = jnp.pad(flat, (0, padded_n - n))

    rows = padded_n // _LANE
    x2d = flat.reshape(rows, _LANE)

    # Scalar parameters folded once (trivial XLA scalar ops), read from SMEM.
    alpha = jnp.asarray(alpha, jnp.float32)
    beta = jnp.asarray(beta, jnp.float32)
    params = jnp.stack([alpha, alpha / beta, -1.0 / beta])

    # Constant block *bytes* regardless of dtype (f32 -> 4096 rows, bf16 ->
    # 8192, int8 -> 16384).  Always a multiple of the sublane tile.
    block_rows_target = max(sublane, target_block_bytes // (_LANE * itemsize))
    block_rows_target = (block_rows_target // sublane) * sublane
    block_rows = min(block_rows_target, rows)

    # Give the second TensorCore (v7x megacore) work on mid-sized tensors:
    # if the whole slab fits one block but is >= ~1 MiB (f32), split in two.
    if block_rows == rows and rows >= 2048:
        half = -(-rows // 2)
        block_rows = -(-half // sublane) * sublane

    grid = (pl.cdiv(rows, block_rows),)

    # VMEM footprint: in + out, double-buffered.  Default target keeps this at
    # ~8 MiB (safe under the v5e 16 MiB scoped default); only set an explicit
    # limit (with headroom) if the caller raised the block size.
    block_bytes = block_rows * _LANE * itemsize
    vmem_needed = 2 * 2 * block_bytes
    compiler_kwargs = dict(dimension_semantics=("parallel",))
    if vmem_needed > 12 * 1024 * 1024:
        compiler_kwargs["vmem_limit_bytes"] = min(vmem_needed + (4 << 20), 64 << 20)

    cost = pl.CostEstimate(
        flops=5 * n,
        transcendentals=n,
        bytes_accessed=2 * n * itemsize,
    )

    out2d = pl.pallas_call(
        _pelu_kernel,
        out_shape=jax.ShapeDtypeStruct((rows, _LANE), dtype),
        grid_spec=pl.GridSpec(
            grid=grid,
            in_specs=[
                pl.BlockSpec(memory_space=pltpu.SMEM),                # params (3,)
                pl.BlockSpec((block_rows, _LANE), lambda i: (i, 0)),  # x tile
            ],
            out_specs=pl.BlockSpec((block_rows, _LANE), lambda i: (i, 0)),
        ),
        compiler_params=pltpu.CompilerParams(**compiler_kwargs),
        cost_estimate=cost,
    )(params, x2d)

    out = out2d.reshape(-1)
    if padded_n != n:
        out = out[:n]
    return out.reshape(orig_shape)


def pelu_reference(x, alpha, beta):
    """Pure-JAX reference mirroring the PyTorch forward exactly."""
    xf = x.astype(jnp.float32)
    posx = jnp.maximum(xf, 0.0)
    negx = jnp.maximum(-xf, 0.0)
    out = alpha / beta * posx + alpha * (jnp.exp(negx / beta) - 1.0)
    return out.astype(x.dtype)


if __name__ == "__main__":
    key = jax.random.PRNGKey(0)
    # NCHW input, as the PyTorch module would receive from a conv stack.
    x = jax.random.normal(key, (2, 4, 16, 16), dtype=jnp.float32)

    # Parameters from PELU.__init__: alpha = 1.0, beta = 1.0 (deterministic).
    alpha = jnp.float32(1.0)
    beta = jnp.float32(1.0)

    out = jax.block_until_ready(pelu(x, alpha, beta))

    ref = pelu_reference(x, alpha, beta)
    assert out.shape == x.shape and out.dtype == x.dtype
    assert jnp.allclose(out, ref, atol=1e-5, rtol=1e-5), "mismatch vs reference"

    # Sanity-check a non-lane-aligned shape exercises the (cheap) pad path.
    x2 = jax.random.normal(jax.random.PRNGKey(1), (3, 5, 7), dtype=jnp.float32)
    out2 = jax.block_until_ready(pelu(x2, alpha, beta))
    assert jnp.allclose(out2, pelu_reference(x2, alpha, beta), atol=1e-5, rtol=1e-5)

    print("KERNEL_OK")
</pallas_src>

<mosaic_0001>
module attributes {stable_mosaic.version = 11 : i64} {
  func.func @_pelu_kernel(%arg0: i32, %arg1: memref<3xf32, #tpu.memory_space<smem>>, %arg2: memref<16x128xf32, #tpu.memory_space<vmem>>, %arg3: memref<16x128xf32, #tpu.memory_space<vmem>>) attributes {dimension_semantics = [#tpu.dimension_semantics<parallel>], iteration_bounds = array<i64: 1>, scalar_prefetch = 0 : i64, scratch_operands = 0 : i64, tpu.core_type = #tpu.core_type<tc>, window_params = [{transform_indices = @transform_0, window_bounds = array<i64: 3>}, {transform_indices = @transform_1, window_bounds = array<i64: 16, 128>}, {transform_indices = @transform_2, window_bounds = array<i64: 16, 128>}]} {
    %c0 = arith.constant 0 : index
    %0 = memref.load %arg1[%c0] : memref<3xf32, #tpu.memory_space<smem>>
    %c1 = arith.constant 1 : index
    %1 = memref.load %arg1[%c1] : memref<3xf32, #tpu.memory_space<smem>>
    %c2 = arith.constant 2 : index
    %2 = memref.load %arg1[%c2] : memref<3xf32, #tpu.memory_space<smem>>
    %c0_0 = arith.constant 0 : index
    %c0_1 = arith.constant 0 : index
    %3 = vector.load %arg2[%c0_0, %c0_1] : memref<16x128xf32, #tpu.memory_space<vmem>>, vector<16x128xf32>
    %cst = arith.constant 0.000000e+00 : f32
    %4 = vector.broadcast %cst : f32 to vector<16x128xf32>
    %5 = arith.maximumf %3, %4 : vector<16x128xf32>
    %cst_2 = arith.constant 0.000000e+00 : f32
    %6 = vector.broadcast %cst_2 : f32 to vector<16x128xf32>
    %7 = arith.minimumf %3, %6 : vector<16x128xf32>
    %8 = vector.broadcast %1 : f32 to vector<16x128xf32>
    %9 = arith.mulf %8, %5 : vector<16x128xf32>
    %10 = vector.broadcast %2 : f32 to vector<16x128xf32>
    %11 = arith.mulf %7, %10 : vector<16x128xf32>
    %12 = math.exp %11 : vector<16x128xf32>
    %cst_3 = arith.constant 1.000000e+00 : f32
    %13 = vector.broadcast %cst_3 : f32 to vector<16x128xf32>
    %14 = arith.subf %12, %13 : vector<16x128xf32>
    %15 = vector.broadcast %0 : f32 to vector<16x128xf32>
    %16 = arith.mulf %15, %14 : vector<16x128xf32>
    %17 = arith.addf %9, %16 : vector<16x128xf32>
    %c0_4 = arith.constant 0 : index
    %c0_5 = arith.constant 0 : index
    %18 = vector.load %arg3[%c0_4, %c0_5] : memref<16x128xf32, #tpu.memory_space<vmem>>, vector<16x128xf32>
    tpu.vector_store %arg3[%c0_4, %c0_5], %17 {strides = array<i32>} : memref<16x128xf32, #tpu.memory_space<vmem>>, vector<16x128xf32>,
    return
  }
  func.func @transform_0(%arg0: i32) -> i32 {
    %c0_i32 = arith.constant 0 : i32
    %c0_i32_0 = arith.constant 0 : i32
    return %c0_i32 : i32
  }
  func.func @transform_1(%arg0: i32) -> (i32, i32) {
    %c0_i32 = arith.constant 0 : i32
    %c0_i32_0 = arith.constant 0 : i32
    return %arg0, %c0_i32 : i32, i32
  }
  func.func @transform_2(%arg0: i32) -> (i32, i32) {
    %c0_i32 = arith.constant 0 : i32
    %c0_i32_0 = arith.constant 0 : i32
    return %arg0, %c0_i32 : i32, i32
  }
}

</mosaic_0001>

<bundles_post_ra>
// kernel: tpu_custom_call.1
= control target key start
LH: loop header
LB: loop body
LE: loop exit
PB: predicated region body
PF: predicated region fallthrough
CT: control target
= control target key end

     0   :  { %7 = vsyncpa [#allocation5], 0  ;;  %s185_s0 = inlined_call_operand.hbm [shape: f32[3], index: 0, kind: input, shape index: {}]   ;;  %s186_s1 = inlined_call_operand.hbm [shape: f32[16,128], index: 1, kind: input, shape index: {}]   ;;  %s187_s2 = inlined_call_operand.hbm [shape: f32[16,128], index: 2, kind: output, shape index: {}]  }
   0x1   :  { %8 = vsyncpa [#allocation3], 0 }
   0x2   :  { %9 = vsyncpa [#allocation4], 0  ;;  %s150_s9 = smov [#allocation2]   ;;  %s151_s12 = smov [#allocation6]  }
   0x3   :  { %17 = dma.hbm_to_smem %s185_s0, 16, %s150_s9, [#allocation5]  }
   0x4   :  { %s23_s13 = sshll.u32 %s151_s12, 4  ;;  %s24_s13 = int_to_ptr.vmem [resolvable:$true] %s23_s13 }
   0x5   :  { %s112_s14 = scalar_lea.vmem %s24_s13, 256  ;;  %p117_p1 = scmp.lt.s32.totalorder %s24_s13, %s24_s13 }
   0x6   :  { %p113_p0 = scmp.ne.s32.totalorder %s24_s13, %s112_s14  ;;  %p118_p2 = scmp.lt.s32.totalorder %s112_s14, %s112_s14 }
   0x8   :  { %p119_p3 = por %p118_p2, %p117_p1 }
   0xa   :  { %p120_p4 = pnand %p119_p3, %p113_p0 }
   0xc   :  { %123 = shalt.err (!%p120_p4)
}
   0xd   :  { %s152_s15 = smov 128   ;;  %s153_s16 = smov 8  }
   0xe   :  { %29 = dma.hbm_to_vmem [thread:$0]  %s186_s1, 256, %s24_s13, [#allocation3], %s152_s15, %s152_s15, %s153_s16  }
   0xf   :  { %144 = dma.done.wait [#allocation5], 16  }
  0x10   :  { %145 = vsyncadd [#allocation5], 4294967280 }
  0x11   :  { %146 = dma.done.wait [#allocation3], 256  }
  0x12   :  { %147 = vsyncadd [#allocation3], 4294967040 }
  0x13   :  { %36 = sfence }
  0x14   :  { %s84_s0 = sld [smem:[#allocation2 + $0x2]]  ;;  %v40_v0 = vld [vmem:[#allocation6] sm:$0xff]  ;;  %v41_v1 = vld [vmem:[#allocation6 + $0x8] sm:$0xff]  ;;  %s154_s1 = smov [#allocation7]  }
  0x15   :  { %v44_v2 = vmin.f32 %v40_v0, 0.0  ;;  %v45_v3 = vmin.f32 %v41_v1, 0.0  ;;  %s83_s19 = sld [smem:[#allocation2 + $0x1]]  ;;  %v42_v9 = vmax.f32 %v40_v0, 0.0  ;;  %v43_v11 = vmax.f32 %v41_v1, 0.0  ;;  %s70_s21 = sshll.u32 %s154_s1, 4  ;;  %s71_s21 = int_to_ptr.vmem [resolvable:$true] %s70_s21 }
  0x16   :  { %s37_s20 = sld [smem:[#allocation2]]  ;;  %s124_s22 = scalar_lea.vmem %s71_s21, 256 }
  0x17   :  { %p125_p5 = scmp.ne.s32.totalorder %s71_s21, %s124_s22  ;;  %p129_p6 = scmp.lt.s32.totalorder %s71_s21, %s71_s21 }
  0x18   :  { %p130_p7 = scmp.lt.s32.totalorder %s124_s22, %s124_s22 }
  0x1a   :  { %v49_v4 = vstv %s84_s0  ;;  %p131_p8 = por %p130_p7, %p129_p6 }
  0x1b   :  { %v50_v5 = vmul.f32 %v49_v4, %v44_v2  ;;  %v51_v6 = vmul.f32 %v49_v4, %v45_v3  ;;  %v46_v10 = vstv %s83_s19 }
  0x1c   :  { %v58_v13 = vstv %s37_s20  ;;  %v47_v15 = vmul.f32 %v46_v10, %v42_v9  ;;  %v48_v17 = vmul.f32 %v46_v10, %v43_v11  ;;  %p132_p9 = pnand %p131_p8, %p125_p5 }
  0x1d   :  { %v52_v7 = vmul.f32 1.442695, %v50_v5  ;;  %v54_v8 = vmul.f32 1.442695, %v51_v6 }
  0x1f   :  { %92 = vpow2.f32 %v52_v7 }
  0x20   :  { %94 = vpow2.f32 %v54_v8 }
  0x2c   :  { %v93_v12 = vpop.eup %92 }
  0x2d   :  { %v95_v14 = vpop.eup %94  ;;  %v85_v16 = vadd.f32 -1.0, %v93_v12 }
  0x2e   :  { %v86_v18 = vadd.f32 -1.0, %v95_v14 }
  0x2f   :  { %v59_v19 = vmul.f32 %v85_v16, %v58_v13 }
  0x30   :  { %v60_v20 = vmul.f32 %v86_v18, %v58_v13 }
  0x31   :  { %v61_v21 = vadd.f32 %v59_v19, %v47_v15 }
  0x32   :  { %v62_v22 = vadd.f32 %v60_v20, %v48_v17 }
  0x33   :  { %63 = vst [vmem:[#allocation7] sm:$0xff] %v61_v21 }
  0x34   :  { %64 = vst [vmem:[#allocation7 + $0x8] sm:$0xff] %v62_v22 }
  0x35   :  { %135 = shalt.err (!%p132_p9)
}
  0x36   :  { %76 = dma.vmem_to_hbm [thread:$0]  %s71_s21, 256, %s187_s2, [#allocation4], %s152_s15, %s152_s15, %s153_s16  }
  0x37   :  { %148 = dma.done.wait [#allocation4], 256  }
  0x38   :  { %149 = vsyncadd [#allocation4], 4294967040 }
  0x39   :  { %80 = vsyncpa [#allocation3], 1 }
  0x3a   :  { %81 = vsyncpa [#allocation4], 1 }
  0x3b   :  { %82 = vsyncpa [#allocation5], 1 }

</bundles_post_ra>
